<compile_context>
chip_gen: v7x
topology: tpu7x:2x2x1
jax: 0.10.0
libtpu: 0.0.40
codegen_flags: <defaults>
</compile_context>

<pallas_src>
import functools

import numpy as np
import jax
import jax.numpy as jnp
from jax.experimental import pallas as pl
from jax.experimental.pallas import tpu as pltpu


_VMEM = pl.BlockSpec(memory_space=pltpu.MemorySpace.VMEM)


# ----------------------------- helpers --------------------------------------

def _log_sigmoid(x):
    # numerically stable log(sigmoid(x)) = min(x, 0) - log1p(exp(-|x|))
    return jnp.minimum(x, 0.0) - jnp.log1p(jnp.exp(-jnp.abs(x)))


def _vmem_limit_bytes():
    """Generation-aware scoped-VMEM budget (v5e/v6e: 128 MiB phys, v7x: 64 MiB)."""
    cap = 64 * 1024 * 1024
    try:
        cap = int(getattr(pltpu.get_tpu_info(), "vmem_capacity_bytes", cap))
    except Exception:
        pass
    # ~25% headroom for compiler-internal scratch, never more than 96 MiB
    return int(max(32 * 1024 * 1024, min(cap * 3 // 4, 96 * 1024 * 1024)))


def _choose_tile_rows(total, target):
    """Row tile (second-minor axis): multiple of 8; ragged tail is masked in-kernel."""
    target = max(8, (int(target) // 8) * 8)
    return total if total <= target else target


def _choose_tile_lanes(total, target):
    """Lane tile: full extent when small, else a multiple of 128 <= target.
    The extent does NOT have to divide `total`; the ragged final block is masked
    in-kernel and its out-of-range writes are dropped by Pallas."""
    target = max(128, (int(target) // 128) * 128)
    return total if total <= target else target


def _choose_cmg_chunk(n, target):
    """Column-chunk for the InfoNCE logits: a multiple of 128 that divides n
    (keeps the in-kernel diag slice in bounds), else the full extent."""
    if n <= target or n % 128 != 0:
        return n
    cb = max(128, (int(target) // 128) * 128)
    while n % cb != 0:
        cb -= 128
    return cb


# --------------------------- Pallas kernels ---------------------------------

def _cam2d_kernel(cam_ref, cls_ref, sum_ref, res_ref, *, hw_total, tile_hw):
    """2D CAM: per-(b,v) spatial sum + per-tile negative-class softmax.

    cam_ref: (C, T_HW) tile of one (batch, view).  cls_ref: (C, 1) class labels.
    sum_ref: (C, 1) partial-sum output (resident across the hw grid axis).
    res_ref: (C, T_HW) softmax output tile.
    """
    hw = pl.program_id(1)
    tile = cam_ref[...].astype(jnp.float32)              # (C, T_HW)
    cls = cls_ref[...].astype(jnp.float32)                # (C, 1)

    @pl.when(hw == 0)
    def _():
        sum_ref[...] = jnp.zeros_like(sum_ref)

    # mask the ragged final HW tile before accumulating
    cols = hw * tile_hw + jax.lax.broadcasted_iota(jnp.int32, (1, tile_hw), 1)
    valid = cols < hw_total
    sum_ref[...] += jnp.sum(jnp.where(valid, tile, 0.0), axis=-1, keepdims=True)

    # negative softmax over the class (sublane) axis -- independent per column
    neg = tile + (1.0 - cls) * (-1e6)
    mx = jnp.max(neg, axis=0, keepdims=True)
    e = jnp.exp(neg - mx)
    denom = jnp.sum(e, axis=0, keepdims=True)             # (1, T_HW)
    res_ref[...] = (e * pl.reciprocal(denom, approx=True)).astype(res_ref.dtype)


def _cam3d_kernel(feat_ref, bidx_ref, label_ref, sum_ref, cnt_ref, res_ref, *,
                  n_rows, tile_m, n_batch, tiles_per_core):
    """3D CAM: per-batch class-sum/count accumulation over M tiles + softmax.

    feat_ref: (T_M, C) point CAM.  bidx_ref: (T_M, 1) int32 batch ids.
    label_ref: (B, C).  sum_ref: (B, C) per-core partial sums.
    cnt_ref: (1, B) per-core partial counts.  res_ref: (T_M, C) softmax tile.
    """
    c = pl.program_id(0)
    m = pl.program_id(1)
    f = feat_ref[...].astype(jnp.float32)                 # (T_M, C)
    bidx = bidx_ref[...]                                   # (T_M, 1) int32
    lab = label_ref[...].astype(jnp.float32)               # (B, C)

    @pl.when(m == 0)
    def _():
        sum_ref[...] = jnp.zeros_like(sum_ref)
        cnt_ref[...] = jnp.zeros_like(cnt_ref)

    # validity mask for a ragged final tile (global row index)
    row0 = (c * tiles_per_core + m) * tile_m
    rows = row0 + jax.lax.broadcasted_iota(jnp.int32, (tile_m, 1), 0)
    valid = rows < n_rows                                   # (T_M, 1)

    # in-kernel batch one-hot (no dense (M, B) one-hot streamed from HBM)
    bcols = jax.lax.broadcasted_iota(jnp.int32, (tile_m, n_batch), 1)
    oh = jnp.logical_and(valid, bidx == bcols).astype(jnp.float32)   # (T_M, B)
    f_clean = jnp.where(valid, f, 0.0)

    # per-batch partial sums via one matmul; counts via a plain column sum
    sum_ref[...] += jax.lax.dot_general(oh, f_clean, (((0,), (0,)), ((), ())),
                                        preferred_element_type=jnp.float32)
    cnt_ref[...] += jnp.sum(oh, axis=0, keepdims=True)               # (1, B)

    # per-point class-label row + negative softmax over classes
    lab_m = jnp.dot(oh, lab, preferred_element_type=jnp.float32)     # (T_M, C)
    neg = f + (1.0 - lab_m) * (-1e6)
    mx = jnp.max(neg, axis=-1, keepdims=True)
    e = jnp.exp(neg - mx)
    denom = jnp.sum(e, axis=-1, keepdims=True)                       # (T_M, 1)
    res_ref[...] = (e * pl.reciprocal(denom, approx=True)).astype(res_ref.dtype)


def _cmg_kernel(nvalid_ref, k_ref, q_ref, loss_ref, m_sc, l_sc, d_sc, *, cb, inv_t):
    """Batched InfoNCE with column-chunked online logsumexp.

    k_ref: (n, D) resident per batch.  q_ref: (cb, D) column chunk.
    loss_ref: (1, 1) per-batch loss.  m_sc/l_sc: (n, 1) online-lse state.
    d_sc: (1, 1) accumulated positive-pair (diagonal) sum.
    """
    b = pl.program_id(0)
    j = pl.program_id(1)
    nv = nvalid_ref[b]

    @pl.when(j == 0)
    def _():
        m_sc[...] = jnp.full_like(m_sc, -jnp.inf)
        l_sc[...] = jnp.zeros_like(l_sc)
        d_sc[...] = jnp.zeros_like(d_sc)

    # fold the 1/T temperature into k once (n*D muls instead of n*n divides)
    ks = k_ref[...].astype(jnp.float32) * inv_t            # (n, D)
    qc = q_ref[...].astype(jnp.float32)                    # (cb, D)

    logits = jax.lax.dot_general(ks, qc, (((1,), (1,)), ((), ())),
                                 preferred_element_type=jnp.float32)  # (n, cb)
    cols = j * cb + jax.lax.broadcasted_iota(jnp.int32, (1, cb), 1)
    logits = jnp.where(cols < nv, logits, -1e30)           # mask padded columns

    m_prev = m_sc[...]
    m_new = jnp.maximum(m_prev, jnp.max(logits, axis=1, keepdims=True))
    l_sc[...] = (jnp.exp(m_prev - m_new) * l_sc[...]
                 + jnp.sum(jnp.exp(logits - m_new), axis=1, keepdims=True))
    m_sc[...] = m_new

    # positive-pair (diagonal) contribution for the rows covered by this chunk
    off = pl.multiple_of(j * cb, cb)
    k_rows = k_ref[pl.ds(off, cb), :].astype(jnp.float32) * inv_t     # (cb, D)
    rows_c = off + jax.lax.broadcasted_iota(jnp.int32, (cb, 1), 0)
    dvals = jnp.sum(k_rows * qc, axis=1, keepdims=True)               # (cb, 1)
    d_sc[...] += jnp.sum(jnp.where(rows_c < nv, dvals, 0.0), keepdims=True)

    @pl.when(j == pl.num_programs(1) - 1)
    def _():
        rows = jax.lax.broadcasted_iota(jnp.int32, m_sc.shape, 0)     # (n, 1)
        lse = m_sc[...] + jnp.log(l_sc[...])
        lse_sum = jnp.sum(jnp.where(rows < nv, lse, 0.0), keepdims=True)
        denom = jnp.maximum(nv, 1).astype(jnp.float32)
        loss_ref[...] = (lse_sum - d_sc[...]) / denom


def _msml_kernel(pred_ref, cls_ref, loss_ref):
    """multilabel_soft_margin_loss (mean reduction) on a small (B, C) tensor."""
    p = pred_ref[...].astype(jnp.float32)
    y = cls_ref[...].astype(jnp.float32)
    per = -(y * _log_sigmoid(p) + (1.0 - y) * _log_sigmoid(-p))
    loss_ref[...] = jnp.mean(per, keepdims=True)


# --------------------------- kernel wrappers --------------------------------

def cam2d_pallas(cam3, cls3, v_num, *, tile_hw=None, out_dtype=jnp.float32):
    """cam3: (B*V, C, HW) native-layout CAM; cls3: (B, C, 1) labels.

    Returns predict (B, C) and the negative softmax in native (B*V, C, HW) layout.
    """
    BV, C, HW = cam3.shape
    budget = _vmem_limit_bytes()
    if tile_hw is None:
        tile_hw = budget // (6 * C * 4)     # ~2x dbl-buffered in + 2x out + slack
    tile_hw = _choose_tile_lanes(HW, min(max(int(tile_hw), 128), 32768))
    n_hw = pl.cdiv(HW, tile_hw)
    kernel = functools.partial(_cam2d_kernel, hw_total=HW, tile_hw=tile_hw)
    sums, res = pl.pallas_call(
        kernel,
        grid=(BV, n_hw),
        in_specs=[pl.BlockSpec((None, C, tile_hw), lambda bv, hw: (bv, 0, hw)),
                  pl.BlockSpec((None, C, 1), lambda bv, hw: (bv // v_num, 0, 0))],
        out_specs=(pl.BlockSpec((None, C, 1), lambda bv, hw: (bv, 0, 0)),
                   pl.BlockSpec((None, C, tile_hw), lambda bv, hw: (bv, 0, hw))),
        out_shape=(jax.ShapeDtypeStruct((BV, C, 1), jnp.float32),
                   jax.ShapeDtypeStruct((BV, C, HW), out_dtype)),
        compiler_params=pltpu.CompilerParams(
            dimension_semantics=("parallel", "arbitrary"),
            vmem_limit_bytes=budget),
    )(cam3, cls3)
    B = BV // v_num
    # tiny wrapper reduction: per-(b,v) HW sums -> per-batch mean over (V, H, W)
    predict = jnp.sum(sums.reshape(B, v_num, C), axis=1) / float(v_num * HW)
    return predict, res


def cam3d_pallas(feat, batch_idx, label, *, tile_m=None, out_dtype=jnp.float32):
    """feat: (M, C) gathered point CAM; batch_idx: (M, 1) int32; label: (B, C)."""
    M, C = feat.shape
    B = label.shape[0]
    budget = _vmem_limit_bytes()
    if tile_m is None:
        tile_m = budget // (8 * max(C, 128) * 4)
    tile_m = _choose_tile_rows(M, min(max(int(tile_m), 8), 8192))
    grid_m = pl.cdiv(M, tile_m)
    # leading "parallel" axis so both v7x TensorCores get half of the M tiles
    ncores = 2 if (grid_m % 2 == 0 and grid_m >= 2) else 1
    tiles_per_core = grid_m // ncores
    kernel = functools.partial(_cam3d_kernel, n_rows=M, tile_m=tile_m,
                               n_batch=B, tiles_per_core=tiles_per_core)
    sums, cnts, res = pl.pallas_call(
        kernel,
        grid=(ncores, tiles_per_core),
        in_specs=[pl.BlockSpec((tile_m, C), lambda c, m: (c * tiles_per_core + m, 0)),
                  pl.BlockSpec((tile_m, 1), lambda c, m: (c * tiles_per_core + m, 0)),
                  pl.BlockSpec((B, C), lambda c, m: (0, 0))],
        out_specs=(pl.BlockSpec((None, B, C), lambda c, m: (c, 0, 0)),
                   pl.BlockSpec((None, 1, B), lambda c, m: (c, 0, 0)),
                   pl.BlockSpec((tile_m, C), lambda c, m: (c * tiles_per_core + m, 0))),
        out_shape=(jax.ShapeDtypeStruct((ncores, B, C), jnp.float32),
                   jax.ShapeDtypeStruct((ncores, 1, B), jnp.float32),
                   jax.ShapeDtypeStruct((M, C), out_dtype)),
        compiler_params=pltpu.CompilerParams(
            dimension_semantics=("parallel", "arbitrary"),
            vmem_limit_bytes=budget),
    )(feat, batch_idx, label)
    # combine per-core partials; EXACT division on the tiny (B, C) tensor
    cnt = jnp.maximum(jnp.sum(cnts, axis=(0, 1)), 1.0)[:, None]      # (B, 1)
    cls_feat = jnp.sum(sums, axis=0) / cnt
    return cls_feat, res
    # TODO(synk): for C << 128 a class-major (C, M) result layout would make the
    # res stores lane-dense (biggest lever on v5e); needs consumer agreement.


def cmg_loss_pallas(nvalid, k, q, *, col_block=None):
    """nvalid: (B,) int32 valid counts; k, q: (B, n, D) padded features."""
    B, n, D = k.shape
    budget = _vmem_limit_bytes()
    if col_block is None:
        col_block = max(128, budget // (8 * n * 4))   # (n, cb) logits chunk budget
    cb = _choose_cmg_chunk(n, int(col_block))
    n_cb = n // cb
    kernel = functools.partial(_cmg_kernel, cb=cb, inv_t=1.0 / 0.07)
    grid_spec = pltpu.PrefetchScalarGridSpec(
        num_scalar_prefetch=1,
        grid=(B, n_cb),
        in_specs=[pl.BlockSpec((None, n, D), lambda b, j, nv: (b, 0, 0)),
                  pl.BlockSpec((None, cb, D), lambda b, j, nv: (b, j, 0))],
        out_specs=pl.BlockSpec((None, 1, 1), lambda b, j, nv: (b, 0, 0)),
        scratch_shapes=[pltpu.VMEM((n, 1), jnp.float32),
                        pltpu.VMEM((n, 1), jnp.float32),
                        pltpu.VMEM((1, 1), jnp.float32)])
    out = pl.pallas_call(
        kernel,
        grid_spec=grid_spec,
        out_shape=jax.ShapeDtypeStruct((B, 1, 1), jnp.float32),
        compiler_params=pltpu.CompilerParams(
            dimension_semantics=("parallel", "arbitrary"),
            vmem_limit_bytes=budget),
    )(nvalid, k, q)
    return out            # (B, 1, 1) per-batch losses


def msml_pallas(pred, cls):
    loss = pl.pallas_call(
        _msml_kernel,
        out_shape=jax.ShapeDtypeStruct((1, 1), jnp.float32),
        in_specs=[_VMEM, _VMEM],
        out_specs=_VMEM,
    )(pred, cls)
    return loss[0, 0]


# ----------------------------- module ---------------------------------------

class _Args:
    def __init__(self, **kw):
        self.__dict__.update(kw)

    def get(self, k, default=None):
        return self.__dict__.get(k, default)


class SparseTensorMock:
    """Minimal stand-in for a MinkowskiEngine sparse tensor (.F features, .C coords)."""
    def __init__(self, F, C):
        self.F = F
        self.C = C


class SparseInputMock:
    def __init__(self, inverse_mapping, unique_index):
        self.inverse_mapping = inverse_mapping
        self.unique_index = unique_index


class WSegPC_Loss:
    def __init__(self, args):
        self.loss_weight = {'cam_2d': 1.0, 'cam_3d': 1.0, 'cmg_2d': 1.0, 'cmg_3d': 1.0,
                            'rpc_2d': 1.0, 'rpc_3d': 1.0, 'seg_2d': 1.0, 'seg_3d': 1.0}
        self.classes = args.classes
        self.arch = args.arch
        self.loss_weight['cam_2d'] = args.cam_2d_weight
        self.loss_weight['cam_3d'] = args.cam_3d_weight
        self.cmg_loss = args.cmg_loss
        self.cmg_2d_num_matches = args.cmg_2d_num_matches
        self.cmg_3d_num_matches = args.cmg_3d_num_matches
        self.loss_weight['cmg_2d'] = args.cmg_2d_weight
        self.loss_weight['cmg_3d'] = args.cmg_3d_weight
        self.rpc_loss = args.rpc_loss
        self.loss_weight['rpc_2d'] = args.rpc_2d_weight
        self.loss_weight['rpc_3d'] = args.rpc_3d_weight
        # TODO(synk): FreeMatch (rpc_match_alg_*) has no provided definition; rpc branch unsupported.
        self.pseudo_label_2d = args.get('pseudo_label_2d', False)
        self.loss_weight['seg_2d'] = args.get('pseudo_label_2d_weight', 1.0)
        self.pseudo_label_3d = args.get('pseudo_label_3d', False)
        self.loss_weight['seg_3d'] = args.get('pseudo_label_3d_weight', 1.0)
        self.warm_iter_cam = args.warm_iter_cam
        self.current_iter_cam = 0
        self.warm_iter_cmg = args.warm_iter_cmg
        self.current_iter_cmg = 0
        self.warm_iter_rpc = args.warm_iter_rpc
        self.current_iter_rpc = 0
        self.warm_iter_ps = args.warm_iter_ps
        self.current_iter_ps = 0
        self.ignore_label = args.ignore_label
        self.tile_hw = args.get('tile_hw', None)             # None -> auto from VMEM budget
        self.tile_m = args.get('tile_m', None)
        self.cmg_col_block = args.get('cmg_col_block', None)
        self.result_dtype = args.get('result_dtype', jnp.float32)
        # True -> return result_2d in lane-dense (B, V, C, H, W) layout and skip
        # the extra HBM pass of the (B, C, H, W, V) permute (consumer must agree).
        self.native_result_layout = args.get('native_result_layout', False)

    def _cmg(self, fea_a, fea_b, num_matches):
        """Host-side random subsampling (np.random.choice, as in the reference).
        The index vector is padded to num_matches so the gather graph is shape
        stable; padded rows/columns are masked in the single batched kernel."""
        B = len(fea_a)
        D = fea_a[0].shape[1]
        k_list, q_list, nvalid = [], [], []
        for b in range(B):
            fa, fb = fea_a[b], fea_b[b]
            n = fa.shape[0]
            if n > 0:
                m = min(n, num_matches)
                idx = np.random.choice(n, m, replace=False)
                idx_pad = np.zeros((num_matches,), dtype=np.int32)
                idx_pad[:m] = idx
                idx_j = jnp.asarray(idx_pad)
                k_list.append(jnp.take(fa, idx_j, axis=0))     # (num_matches, D)
                q_list.append(jnp.take(fb, idx_j, axis=0))
            else:
                m = 0
                k_list.append(jnp.zeros((num_matches, D), fa.dtype))
                q_list.append(jnp.zeros((num_matches, D), fb.dtype))
            nvalid.append(m)
        k = jnp.stack(k_list)
        q = jnp.stack(q_list)
        nv = jnp.asarray(nvalid, dtype=jnp.int32)
        per_b = cmg_loss_pallas(nv, k, q, col_block=self.cmg_col_block)   # (B, 1, 1)
        return jnp.sum(per_b)

    def forward(self, output_3d, output_2d, sinput_student, output_3d_ema, output_2d_ema,
                label_3d, label_2d, labels_cls, links):
        inverse_map = sinput_student.inverse_mapping
        unique_index = sinput_student.unique_index  # only used by the disabled rpc branch

        label_3d, label_3d_sp = label_3d[:, 0], label_3d[:, 1]
        label_2d, label_2d_sp = label_2d[:, 0], label_2d[:, 1]
        labels_cls_3d = labels_cls[:, :, 0].astype(jnp.float32)
        labels_cls_2d = labels_cls[:, :, 1].astype(jnp.float32)

        loss_dict = {}
        V_NUM = links.shape[-1]
        B = labels_cls.shape[0]                 # static -> no device->host sync
        warm_cam_weight = min(1.0 * self.current_iter_cam / self.warm_iter_cam, 1.0)
        self.current_iter_cam += 1

        # ---------------- 3D CAM loss (tiled Pallas, both TCs on v7x) ----------------
        cam_3d_up = output_3d[0]
        feat_3d = jnp.take(cam_3d_up.F, inverse_map, axis=0)                 # (M, C), native dtype
        batch_idx = jnp.take(cam_3d_up.C[:, 0].astype(jnp.int32),
                             inverse_map, axis=0)[:, None]                   # (M, 1)
        cls_feat_3d, result_3d = cam3d_pallas(feat_3d, batch_idx, labels_cls_3d,
                                              tile_m=self.tile_m,
                                              out_dtype=self.result_dtype)
        loss_cam_3d = msml_pallas(cls_feat_3d, labels_cls_3d)
        loss_dict['cam_3d'] = loss_cam_3d * warm_cam_weight

        # ---------------- 2D CAM loss (tiled Pallas, native lane-dense layout) ----------------
        cam2d = output_2d[0]                     # (V_B, C, H, W) = (B*V, C, H, W)
        V_B, C, H, W = cam2d.shape
        cam3 = cam2d.reshape(V_B, C, H * W)      # free reshape; no transpose, no astype
        predict_2d, res_native = cam2d_pallas(cam3, labels_cls_2d[:, :, None], V_NUM,
                                              tile_hw=self.tile_hw,
                                              out_dtype=self.result_dtype)
        loss_cam_2d = msml_pallas(predict_2d, labels_cls_2d)
        loss_dict['cam_2d'] = loss_cam_2d * warm_cam_weight
        if self.native_result_layout:
            result_2d = res_native.reshape(B, V_NUM, C, H, W)   # lane-dense, no extra HBM pass
        else:
            # reference-compatible (B, C, H, W, V) layout: one XLA transpose pass
            result_2d = jnp.transpose(res_native.reshape(B, V_NUM, C, H, W), (0, 2, 3, 4, 1))

        # ---------------- CMG (InfoNCE) losses ----------------
        if self.cmg_loss:
            self.current_iter_cmg += 1
            warm_cmg_weight = min(1.0 * self.current_iter_cmg / self.warm_iter_cmg, 1.0)
            feat_proj_3d = output_3d[1]
            feat_detach_2d = output_2d[2]
            loss_dict['cmg_3d'] = self._cmg(feat_proj_3d, feat_detach_2d,
                                            self.cmg_3d_num_matches) * warm_cmg_weight
            feat_detach_3d = output_3d[2]
            feat_proj_2d = output_2d[1]
            loss_dict['cmg_2d'] = self._cmg(feat_proj_2d, feat_detach_3d,
                                            self.cmg_2d_num_matches) * warm_cmg_weight

        # TODO(synk): rpc_loss branch (FreeMatch.train_step + torch_scatter.scatter_mean) not implemented.
        # TODO(synk): pseudo-label CrossEntropy (seg_2d / seg_3d) branch not implemented (disabled via args).

        loss_sum = 0.0
        for k in list(loss_dict.keys()):
            loss_dict[k] = loss_dict[k] * self.loss_weight[k]
            loss_sum = loss_sum + loss_dict[k]
        loss_dict['loss'] = loss_sum
        return loss_dict, result_3d, result_2d


# ------------------------ pure-JAX reference (for checking) ------------------

def _reference_losses(cam2d, F3, C3, inverse_map, labels_cls, V_NUM,
                      f3_proj, f2_det, f2_proj, f3_det, num_matches):
    B = labels_cls.shape[0]
    lab3 = labels_cls[:, :, 0].astype(jnp.float32)
    lab2 = labels_cls[:, :, 1].astype(jnp.float32)

    feat = F3[inverse_map].astype(jnp.float32)
    bidx = C3[inverse_map][:, 0]
    rows = []
    for b in range(B):
        m = (bidx == b)
        cnt = jnp.maximum(jnp.sum(m.astype(jnp.float32)), 1.0)
        rows.append(jnp.sum(jnp.where(m[:, None], feat, 0.0), axis=0) / cnt)
    cls_feat = jnp.stack(rows)
    loss_cam_3d = jnp.mean(-(lab3 * _log_sigmoid(cls_feat) + (1 - lab3) * _log_sigmoid(-cls_feat)))
    lab_all = lab3[bidx]
    res3 = jax.nn.softmax(feat + (1.0 - lab_all) * (-1e6), axis=1)

    V_B, C, H, W = cam2d.shape
    cam_up = jnp.transpose(cam2d.reshape(B, V_NUM, C, H, W), (0, 2, 3, 4, 1)).astype(jnp.float32)
    pred2 = jnp.mean(cam_up, axis=(2, 3, 4))
    loss_cam_2d = jnp.mean(-(lab2 * _log_sigmoid(pred2) + (1 - lab2) * _log_sigmoid(-pred2)))
    res2 = jax.nn.softmax(cam_up + (1.0 - lab2[:, :, None, None, None]) * (-1e6), axis=1)

    def cmg_ref(fa, fb):
        total = 0.0
        for b in range(len(fa)):
            n = fa[b].shape[0]
            if n > 0:
                idx = np.random.choice(n, min(n, num_matches), replace=False)
                k = fa[b][idx]
                q = fb[b][idx]
                logits = jnp.dot(k, q.T, precision=jax.lax.Precision.HIGHEST) / 0.07
                per = jax.nn.logsumexp(logits, axis=1) - jnp.diag(logits)
                total = total + jnp.mean(per)
        return total

    loss_cmg_3d = cmg_ref(f3_proj, f2_det)
    loss_cmg_2d = cmg_ref(f2_proj, f3_det)
    return dict(cam_3d=loss_cam_3d, cam_2d=loss_cam_2d,
                cmg_3d=loss_cmg_3d, cmg_2d=loss_cmg_2d,
                result_3d=res3, result_2d=res2)


# ------------------------------- main ----------------------------------------

if __name__ == "__main__":
    key = jax.random.PRNGKey(0)
    ks = jax.random.split(key, 16)

    # HW = 160 -> exercises the ragged (masked) 128-lane tile; tile_m=8 -> 6 M-tiles
    # -> exercises the 2-core split of the 3D CAM kernel; num_matches=256 with a
    # 128-column chunk -> exercises the online-logsumexp CMG path + padding masks.
    B, V_NUM, classes, H, W = 2, 2, 8, 10, 16
    V_B = B * V_NUM
    N_vox_per_b = 12
    N_vox = B * N_vox_per_b
    D = 32
    n_pts = [12, 5]
    num_matches = 256

    args = _Args(classes=classes, arch='mink',
                 cam_2d_weight=1.0, cam_3d_weight=1.0,
                 cmg_loss=True,
                 cmg_2d_num_matches=num_matches, cmg_3d_num_matches=num_matches,
                 cmg_2d_weight=1.0, cmg_3d_weight=1.0,
                 rpc_loss=False, rpc_2d_weight=1.0, rpc_3d_weight=1.0, rpc_p_cutoff=0.95,
                 warm_iter_cam=1, warm_iter_cmg=1, warm_iter_rpc=1, warm_iter_ps=1,
                 ignore_label=255,
                 tile_hw=128, tile_m=8, cmg_col_block=128)

    # ----- 3D sparse CAM output (mocked sparse tensor) -----
    F3 = jax.random.normal(ks[0], (N_vox, classes), dtype=jnp.float32)
    batch_col = jnp.repeat(jnp.arange(B, dtype=jnp.int32), N_vox_per_b)
    xyz = jax.random.randint(ks[1], (N_vox, 3), 0, 16, dtype=jnp.int32)
    C3 = jnp.concatenate([batch_col[:, None], xyz], axis=1)
    cam_3d = SparseTensorMock(F3, C3)
    inverse_map = jnp.repeat(jnp.arange(N_vox, dtype=jnp.int32), 2)   # M = 48 points
    unique_index = jnp.arange(N_vox, dtype=jnp.int32) * 2
    sinput_student = SparseInputMock(inverse_map, unique_index)

    # ----- 2D CAM output (NCHW multi-view) -----
    cam_2d = jax.random.normal(ks[2], (V_B, classes, H, W), dtype=jnp.float32)

    # ----- CMG features: per-batch lists of (n_b, D) -----
    f3_proj = [jax.random.normal(ks[3 + i], (n_pts[i], D), dtype=jnp.float32) for i in range(B)]
    f3_det = [jax.random.normal(ks[5 + i], (n_pts[i], D), dtype=jnp.float32) for i in range(B)]
    f2_proj = [jax.random.normal(ks[7 + i], (n_pts[i], D), dtype=jnp.float32) for i in range(B)]
    f2_det = [jax.random.normal(ks[9 + i], (n_pts[i], D), dtype=jnp.float32) for i in range(B)]

    output_3d = (cam_3d, f3_proj, f3_det)
    output_2d = (cam_2d, f2_proj, f2_det)
    output_3d_ema = output_3d
    output_2d_ema = output_2d

    # ----- labels (only class labels are consumed with rpc/pseudo disabled) -----
    M = inverse_map.shape[0]
    label_3d = jnp.zeros((M, 3), dtype=jnp.int32)
    label_2d = jnp.zeros((V_B, 3, H, W), dtype=jnp.int32)
    labels_cls = (jax.random.uniform(ks[11], (B, classes, 2)) > 0.5).astype(jnp.float32)
    links = jnp.zeros((B, 4, 4, V_NUM), dtype=jnp.int32)

    loss_mod = WSegPC_Loss(args)
    loss_mod.current_iter_cam = loss_mod.warm_iter_cam   # past warm-up so CAM losses are non-zero

    np.random.seed(0)
    loss_dict, result_3d, result_2d = loss_mod.forward(
        output_3d, output_2d, sinput_student, output_3d_ema, output_2d_ema,
        label_3d, label_2d, labels_cls, links)
    jax.block_until_ready((loss_dict['loss'], result_3d, result_2d))

    # -------- correctness check against a pure-JAX reference (same RNG stream) --------
    np.random.seed(0)
    ref = _reference_losses(cam_2d, F3, C3, inverse_map, labels_cls, V_NUM,
                            f3_proj, f2_det, f2_proj, f3_det, num_matches)
    # result tensors go through the EUP approximate reciprocal in the softmax epilogue
    np.testing.assert_allclose(np.asarray(result_3d), np.asarray(ref['result_3d']), atol=1e-2)
    np.testing.assert_allclose(np.asarray(result_2d), np.asarray(ref['result_2d']), atol=1e-2)
    np.testing.assert_allclose(float(loss_dict['cam_2d']), float(ref['cam_2d']),
                               rtol=1e-4, atol=1e-5)
    np.testing.assert_allclose(float(loss_dict['cam_3d']), float(ref['cam_3d']),
                               rtol=1e-3, atol=1e-4)
    np.testing.assert_allclose(float(loss_dict['cmg_3d']), float(ref['cmg_3d']),
                               rtol=3e-2, atol=3e-2)
    np.testing.assert_allclose(float(loss_dict['cmg_2d']), float(ref['cmg_2d']),
                               rtol=3e-2, atol=3e-2)

    print("KERNEL_OK")
</pallas_src>

<mosaic_0001>
module attributes {stable_mosaic.version = 11 : i64} {
  func.func @_cam3d_kernel(%arg0: i32, %arg1: i32, %arg2: memref<8x8xf32, #tpu.memory_space<vmem>>, %arg3: memref<8x1xi32, #tpu.memory_space<vmem>>, %arg4: memref<2x8xf32, #tpu.memory_space<vmem>>, %arg5: memref<1x2x8xf32, #tpu.memory_space<vmem>>, %arg6: memref<1x1x2xf32, #tpu.memory_space<vmem>>, %arg7: memref<8x8xf32, #tpu.memory_space<vmem>>) attributes {dimension_semantics = [#tpu.dimension_semantics<parallel>, #tpu.dimension_semantics<arbitrary>], iteration_bounds = array<i64: 2, 3>, scalar_prefetch = 0 : i64, scratch_operands = 0 : i64, tpu.core_type = #tpu.core_type<tc>, window_params = [{transform_indices = @transform_0, window_bounds = array<i64: 8, 8>}, {transform_indices = @transform_1, window_bounds = array<i64: 8, 1>}, {pipeline_mode = #tpu.pipeline_mode<synchronous>, transform_indices = @transform_2, window_bounds = array<i64: 2, 8>}, {transform_indices = @transform_3, window_bounds = array<i64: 1, 2, 8>}, {transform_indices = @transform_4, window_bounds = array<i64: 1, 1, 2>}, {transform_indices = @transform_5, window_bounds = array<i64: 8, 8>}]} {
    %c0 = arith.constant 0 : index
    %c0_0 = arith.constant 0 : index
    %0 = vector.load %arg2[%c0, %c0_0] : memref<8x8xf32, #tpu.memory_space<vmem>>, vector<8x8xf32>
    %c0_1 = arith.constant 0 : index
    %c0_2 = arith.constant 0 : index
    %1 = vector.load %arg3[%c0_1, %c0_2] : memref<8x1xi32, #tpu.memory_space<vmem>>, vector<8x1xi32>
    %c0_3 = arith.constant 0 : index
    %c0_4 = arith.constant 0 : index
    %2 = vector.load %arg4[%c0_3, %c0_4] : memref<2x8xf32, #tpu.memory_space<vmem>>, vector<2x8xf32>
    %c0_i32 = arith.constant 0 : i32
    %3 = arith.cmpi eq, %arg1, %c0_i32 : i32
    %4 = arith.extui %3 : i1 to i32
    %c0_i32_5 = arith.constant 0 : i32
    %5 = arith.cmpi ne, %4, %c0_i32_5 : i32
    scf.if %5 {
      %cst_27 = arith.constant 0.000000e+00 : f32
      %57 = vector.broadcast %cst_27 : f32 to vector<2x8xf32>
      %c0_28 = arith.constant 0 : index
      %c0_29 = arith.constant 0 : index
      %c0_30 = arith.constant 0 : index
      %58 = vector.load %arg5[%c0_28, %c0_29, %c0_30] : memref<1x2x8xf32, #tpu.memory_space<vmem>>, vector<1x2x8xf32>
      %59 = vector.shape_cast %58 : vector<1x2x8xf32> to vector<2x8xf32>
      %60 = vector.shape_cast %57 : vector<2x8xf32> to vector<1x2x8xf32>
      tpu.vector_store %arg5[%c0_28, %c0_29, %c0_30], %60 {strides = array<i32>} : memref<1x2x8xf32, #tpu.memory_space<vmem>>, vector<1x2x8xf32>,
      %cst_31 = arith.constant 0.000000e+00 : f32
      %61 = vector.broadcast %cst_31 : f32 to vector<1x2xf32>
      %c0_32 = arith.constant 0 : index
      %c0_33 = arith.constant 0 : index
      %c0_34 = arith.constant 0 : index
      %62 = vector.load %arg6[%c0_32, %c0_33, %c0_34] : memref<1x1x2xf32, #tpu.memory_space<vmem>>, vector<1x1x2xf32>
      %63 = vector.shape_cast %62 : vector<1x1x2xf32> to vector<1x2xf32>
      %64 = vector.shape_cast %61 : vector<1x2xf32> to vector<1x1x2xf32>
      tpu.vector_store %arg6[%c0_32, %c0_33, %c0_34], %64 {strides = array<i32>} : memref<1x1x2xf32, #tpu.memory_space<vmem>>, vector<1x1x2xf32>,
    } else {
    }
    %c3_i32 = arith.constant 3 : i32
    %6 = arith.muli %arg0, %c3_i32 : i32
    %7 = arith.addi %6, %arg1 : i32
    %c8_i32 = arith.constant 8 : i32
    %8 = arith.muli %7, %c8_i32 : i32
    %9 = tpu.iota {dimensions = array<i32: 0>} : vector<8x1xi32>
    %10 = vector.broadcast %8 : i32 to vector<8x1xi32>
    %11 = arith.addi %10, %9 : vector<8x1xi32>
    %c48_i32 = arith.constant 48 : i32
    %12 = vector.broadcast %c48_i32 : i32 to vector<8x1xi32>
    %13 = arith.cmpi slt, %11, %12 : vector<8x1xi32>
    %14 = tpu.iota {dimensions = array<i32: 1>} : vector<8x2xi32>
    %15 = vector.broadcast %1 : vector<8x1xi32> to vector<8x2xi32>
    %16 = arith.cmpi eq, %15, %14 : vector<8x2xi32>
    %17 = vector.broadcast %13 : vector<8x1xi1> to vector<8x2xi1>
    %18 = arith.andi %17, %16 : vector<8x2xi1>
    %19 = arith.extui %18 : vector<8x2xi1> to vector<8x2xi32>
    %20 = arith.sitofp %19 : vector<8x2xi32> to vector<8x2xf32>
    %cst = arith.constant 0.000000e+00 : f32
    %21 = vector.shape_cast %13 : vector<8x1xi1> to vector<8x1xi1>
    %22 = vector.broadcast %21 : vector<8x1xi1> to vector<8x8xi1>
    %23 = vector.broadcast %cst : f32 to vector<8x8xf32>
    %24 = arith.select %22, %0, %23 : vector<8x8xi1>, vector<8x8xf32>
    %c0_6 = arith.constant 0 : index
    %c0_7 = arith.constant 0 : index
    %c0_8 = arith.constant 0 : index
    %25 = vector.load %arg5[%c0_6, %c0_7, %c0_8] : memref<1x2x8xf32, #tpu.memory_space<vmem>>, vector<1x2x8xf32>
    %26 = vector.shape_cast %25 : vector<1x2x8xf32> to vector<2x8xf32>
    %cst_9 = arith.constant dense<0.000000e+00> : vector<2x8xf32>
    %27 = tpu.matmul %20, %24, %cst_9 {dimension_numbers = #tpu.dot_dimension_numbers<[0], [0], [1], [1], [0, 1, 1, 1], [], []>} : vector<8x2xf32>, vector<8x8xf32>, vector<2x8xf32> -> vector<2x8xf32>
    %28 = arith.addf %26, %27 : vector<2x8xf32>
    %c0_10 = arith.constant 0 : index
    %c0_11 = arith.constant 0 : index
    %c0_12 = arith.constant 0 : index
    %29 = vector.load %arg5[%c0_10, %c0_11, %c0_12] : memref<1x2x8xf32, #tpu.memory_space<vmem>>, vector<1x2x8xf32>
    %30 = vector.shape_cast %29 : vector<1x2x8xf32> to vector<2x8xf32>
    %31 = vector.shape_cast %28 : vector<2x8xf32> to vector<1x2x8xf32>
    tpu.vector_store %arg5[%c0_10, %c0_11, %c0_12], %31 {strides = array<i32>} : memref<1x2x8xf32, #tpu.memory_space<vmem>>, vector<1x2x8xf32>,
    %c0_13 = arith.constant 0 : index
    %c0_14 = arith.constant 0 : index
    %c0_15 = arith.constant 0 : index
    %32 = vector.load %arg6[%c0_13, %c0_14, %c0_15] : memref<1x1x2xf32, #tpu.memory_space<vmem>>, vector<1x1x2xf32>
    %33 = vector.shape_cast %32 : vector<1x1x2xf32> to vector<1x2xf32>
    %cst_16 = arith.constant dense<0.000000e+00> : vector<2xf32>
    %34 = vector.multi_reduction <add>, %20, %cst_16 [0] : vector<8x2xf32> to vector<2xf32>
    %35 = vector.shape_cast %34 : vector<2xf32> to vector<1x2xf32>
    %36 = arith.addf %33, %35 : vector<1x2xf32>
    %c0_17 = arith.constant 0 : index
    %c0_18 = arith.constant 0 : index
    %c0_19 = arith.constant 0 : index
    %37 = vector.load %arg6[%c0_17, %c0_18, %c0_19] : memref<1x1x2xf32, #tpu.memory_space<vmem>>, vector<1x1x2xf32>
    %38 = vector.shape_cast %37 : vector<1x1x2xf32> to vector<1x2xf32>
    %39 = vector.shape_cast %36 : vector<1x2xf32> to vector<1x1x2xf32>
    tpu.vector_store %arg6[%c0_17, %c0_18, %c0_19], %39 {strides = array<i32>} : memref<1x1x2xf32, #tpu.memory_space<vmem>>, vector<1x1x2xf32>,
    %cst_20 = arith.constant dense<0.000000e+00> : vector<8x8xf32>
    %40 = tpu.matmul %20, %2, %cst_20 {dimension_numbers = #tpu.dot_dimension_numbers<[1], [0], [0], [1], [0, 0, 1, 1], [], []>} : vector<8x2xf32>, vector<2x8xf32>, vector<8x8xf32> -> vector<8x8xf32>
    %cst_21 = arith.constant 1.000000e+00 : f32
    %41 = vector.broadcast %cst_21 : f32 to vector<8x8xf32>
    %42 = arith.subf %41, %40 : vector<8x8xf32>
    %cst_22 = arith.constant -1.000000e+06 : f32
    %43 = vector.broadcast %cst_22 : f32 to vector<8x8xf32>
    %44 = arith.mulf %42, %43 : vector<8x8xf32>
    %45 = arith.addf %0, %44 : vector<8x8xf32>
    %cst_23 = arith.constant dense<0xFF800000> : vector<8xf32>
    %46 = vector.multi_reduction <maximumf>, %45, %cst_23 [1] : vector<8x8xf32> to vector<8xf32>
    %47 = vector.shape_cast %46 : vector<8xf32> to vector<8x1xf32>
    %48 = vector.broadcast %47 : vector<8x1xf32> to vector<8x8xf32>
    %49 = arith.subf %45, %48 : vector<8x8xf32>
    %50 = math.exp %49 : vector<8x8xf32>
    %cst_24 = arith.constant dense<0.000000e+00> : vector<8xf32>
    %51 = vector.multi_reduction <add>, %50, %cst_24 [1] : vector<8x8xf32> to vector<8xf32>
    %52 = vector.shape_cast %51 : vector<8xf32> to vector<8x1xf32>
    %53 = tpu.reciprocal %52 {approx = true} : vector<8x1xf32> -> vector<8x1xf32>
    %54 = vector.broadcast %53 : vector<8x1xf32> to vector<8x8xf32>
    %55 = arith.mulf %50, %54 : vector<8x8xf32>
    %c0_25 = arith.constant 0 : index
    %c0_26 = arith.constant 0 : index
    %56 = vector.load %arg7[%c0_25, %c0_26] : memref<8x8xf32, #tpu.memory_space<vmem>>, vector<8x8xf32>
    tpu.vector_store %arg7[%c0_25, %c0_26], %55 {strides = array<i32>} : memref<8x8xf32, #tpu.memory_space<vmem>>, vector<8x8xf32>,
    return
  }
  func.func @transform_0(%arg0: i32, %arg1: i32) -> (i32, i32) {
    %c3_i32 = arith.constant 3 : i32
    %0 = arith.muli %arg0, %c3_i32 : i32
    %1 = arith.addi %0, %arg1 : i32
    %c0_i32 = arith.constant 0 : i32
    %c0_i32_0 = arith.constant 0 : i32
    return %1, %c0_i32 : i32, i32
  }
  func.func @transform_1(%arg0: i32, %arg1: i32) -> (i32, i32) {
    %c3_i32 = arith.constant 3 : i32
    %0 = arith.muli %arg0, %c3_i32 : i32
    %1 = arith.addi %0, %arg1 : i32
    %c0_i32 = arith.constant 0 : i32
    %c0_i32_0 = arith.constant 0 : i32
    return %1, %c0_i32 : i32, i32
  }
  func.func @transform_2(%arg0: i32, %arg1: i32) -> (i32, i32) {
    %c0_i32 = arith.constant 0 : i32
    %c0_i32_0 = arith.constant 0 : i32
    %c0_i32_1 = arith.constant 0 : i32
    return %c0_i32, %c0_i32_0 : i32, i32
  }
  func.func @transform_3(%arg0: i32, %arg1: i32) -> (i32, i32, i32) {
    %c0_i32 = arith.constant 0 : i32
    %c0_i32_0 = arith.constant 0 : i32
    %c0_i32_1 = arith.constant 0 : i32
    return %arg0, %c0_i32, %c0_i32_0 : i32, i32, i32
  }
  func.func @transform_4(%arg0: i32, %arg1: i32) -> (i32, i32, i32) {
    %c0_i32 = arith.constant 0 : i32
    %c0_i32_0 = arith.constant 0 : i32
    %c0_i32_1 = arith.constant 0 : i32
    return %arg0, %c0_i32, %c0_i32_0 : i32, i32, i32
  }
  func.func @transform_5(%arg0: i32, %arg1: i32) -> (i32, i32) {
    %c3_i32 = arith.constant 3 : i32
    %0 = arith.muli %arg0, %c3_i32 : i32
    %1 = arith.addi %0, %arg1 : i32
    %c0_i32 = arith.constant 0 : i32
    %c0_i32_0 = arith.constant 0 : i32
    return %1, %c0_i32 : i32, i32
  }
}

</mosaic_0001>

<bundles_post_ra>
// kernel: tpu_custom_call.1
= control target key start
LH: loop header
LB: loop body
LE: loop exit
PB: predicated region body
PF: predicated region fallthrough
CT: control target
= control target key end

     0   :  { %11 = vsyncpa [#allocation3], 0  ;;  %s1209_s0 = inlined_call_operand.vmem [shape: f32[48,8], index: 0, kind: input, shape index: {}]   ;;  %s1210_s1 = inlined_call_operand.vmem [shape: s32[48,1], index: 1, kind: input, shape index: {}]   ;;  %s1211_s2 = inlined_call_operand.vmem [shape: f32[2,8], index: 2, kind: input, shape index: {}]   ;;  %s1212_s3 = inlined_call_operand.hbm [shape: f32[2,2,8], index: 3, kind: output, shape index: {0}]   ;;  %s1213_s4 = inlined_call_operand.hbm [shape: f32[2,1,2], index: 4, kind: output, shape index: {1}]   ;;  %s1214_s5 = inlined_call_operand.vmem [shape: f32[48,8], index: 5, kind: output, shape index: {2}]  }
   0x1   :  { %13 = vsyncpa [#allocation3 + $0x1], 0 }
   0x2   :  { %14 = vsyncpa [#allocation5], 0 }
   0x3   :  { %16 = vsyncpa [#allocation5 + $0x1], 0  ;;  %s1014_s18 = smov 0   ;;  %s1016_s19 = smov 0  }
   0x4   :  { %s1018_s20 = smov 0   ;;  %s1020_s21 = smov 0  }
   0x5   :  { %s1022_s22 = smov 0   ;;  %s1024_s23 = smov 0  }
   0x6   :  { %s1026_s24 = smov 0   ;;  %s1028_s25 = smov 0  }
   0x7 LB: > { %1217 = sst [smem:[#allocation8_spill]] %s972_s24  ;;  %s730_s26 = sadd.s32 4294967295, %s976_s25   ;;  %s976_s25 = sphi %s1028_s25, %s22_s25   ;;  %s972_s24 = sphi %s1026_s24, %s1225_s24   ;;  %s968_s23 = sphi %s1024_s23, %s1230_s23   ;;  %s964_s22 = sphi %s1022_s22, %s1223_s22   ;;  %s960_s21 = sphi %s1020_s21, %s1229_s21   ;;  %s956_s20 = sphi %s1018_s20, %s1228_s20   ;;  %s952_s19 = sphi %s1016_s19, %s1227_s19   ;;  %s948_s18 = sphi %s1014_s18, %s1226_s18  }
   0x8   : > { %s731_s27 = sadd.s32 4294967294, %s976_s25   ;;  %s31_s28 = sadd.s32 1, %s968_s23 }
   0x9   : > { %p32_p0 = scmp.ge.s32.totalorder %s31_s28, 3  ;;  %s34_s29 = sadd.s32 1, %s972_s24 }
   0xa   : > { %p132_p1 = scmp.ne.s32.totalorder %s956_s20, %s952_s19  ;;  %p133_p2 = scmp.eq.s32.totalorder %s730_s26, 5 }
   0xb   : > { %s1232_s28 = smov (%p32_p0, %s31_s28), 0  ;;  %s1234_s29 = smov (!%p32_p0, %s34_s29), %s972_s24 }
   0xc   : > { %1218 = sst [smem:[#allocation9_spill]] %s1232_s28  ;;  %p1063_p3 = por %p133_p2, %p132_p1 }
   0xd   : > { %p138_p4 = scmp.ne.s32.totalorder %s952_s19, %s948_s18  ;;  %p36_p5 = scmp.ge.s32.totalorder %s1234_s29, 2 }
   0xe   : > { %p139_p6 = scmp.eq.s32.totalorder %s731_s27, 5  ;;  %p734_p7 = scmp.ge.s32.totalorder %s976_s25, 1 }
   0xf   : > { %p238_p8 = scmp.lt.s32.totalorder %s976_s25, 7  ;;  %s1236_s29 = smov (%p36_p5, %s1234_s29), 0 }
  0x10   : > { %1220 = sst [smem:[#allocation10_spill]] %s1236_s29  ;;  %p1073_p9 = por %p139_p6, %p138_p4 }
  0x11   : > { %p239_p10 = pnand %p734_p7, %p238_p8  ;;  %s119_s7 = ssub.s32 %s972_s24, %s1236_s29 }
  0x12   : > { %s122_s8 = sadd.s32 1, %s956_s20  ;;  %p120_p11 = scmp.eq.s32.totalorder %s119_s7, 0  ;;  %v309_v0 = vld [vmem:[%s1211_s2] sm:$0x3] (!%p239_p10) }
  0x13   : > { %242 = sbr.rel (%p239_p10) target bundleno = 700 (0x2bc), region = 32  ;;  %s1084_s10 = sand.u32 (!%p239_p10), 1, %s952_s19  }
  0x14   : > { %s1081_s9 = scalar_select %p120_p11, %s956_s20, %s122_s8  }
  0x15   : > { %s283_s11 = smul.u32 (!%p239_p10), 3, %s964_s22  ;;  %s735_s14 = sshll.u32 (!%p239_p10), %s1084_s10, 1 }
  0x16   : > { %p739_p13 = scmp.ne.s32.totalorder (!%p239_p10), %s960_s21, 0 }
  0x17   : > { %s284_s15 = sadd.s32 (!%p239_p10), %s960_s21, %s283_s11  ;;  %s1106_s11 = scalar_lea.vmem (!%p239_p10), [#allocation2], %s735_s14 }
  0x18   : > { %p285_p12 = scmp.lt.s32.totalorder (!%p239_p10), %s284_s15, 5 }
  0x1a   : > { %s286_s16 = scalar_select %p285_p12, %s284_s15, 5 }
  0x1b   : > { %313 = sbr.rel (%p739_p13) target bundleno = 34 (0x22), region = 36  ;;  %vm314_vm0 = vcmask (!%p739_p13), 58368   ;;  %vm316_vm1 = vcmask (!%p739_p13), 8192   ;;  %v978_v3 = vmov (!%p739_p13), 0.0  }
  0x1c   : > { %s1092_s17 = sshll.u32 %s286_s16, 3  ;;  %s1109_s16 = scalar_lea.vmem [#allocation4], %s1084_s10  ;;  %315 = vst.msk [vmem:[%s1106_s11] sm:$0x3] (!%p739_p13), %vm314_vm0, %v978_v3 }
  0x1d   : > { %s288_s7 = scalar_lea.vmem %s1209_s0, %s1092_s17  ;;  %s296_s28 = scalar_lea.vmem %s1210_s1, %s1092_s17  ;;  %317 = vst.msk [vmem:[%s1109_s16] sm:$0x1] (!%p739_p13), %vm316_vm1, %v978_v3 }
  0x1e   : > { %v307_v1 = vld [vmem:[%s288_s7] sm:$0xff] }
  0x1f   : > { %v308_v2 = vld [vmem:[%s296_s28] sm:$0xff] }
  0x22 PF: > { %s740_s29 = sshll.u32 %s284_s15, 3  ;;  %v321_v4 = vlaneseq  ;;  %v979_v5 = vmov 0   ;;  %v980_v8 = vmov 0.0   ;;  %vm463_vm2 = vcmask 1041408   ;;  %s747_s21 = sshll.u32 %s964_s22, 5 }
  0x23   : > { %845 = vset.pattern.permute.xlu0 %v979_v5  ;;  %v323_v6 = vstv %s740_s29  ;;  %760 = vmatprep.subr.mxu1 %v980_v8  ;;  %vm981_vm3 = vmmov 0   ;;  %vm449_vm6 = vcmask 15360   ;;  %vm458_vm8 = vcmask 8192   ;;  %v338_v35 = vld [vmem:[%s1106_s11] sm:$0x3]  ;;  %s576_s24 = sshll.u32 %s1106_s11, 4  ;;  %s1129_s15 = scalar_lea.hbm %s1212_s3, %s747_s21  ;;  %s577_s24 = int_to_ptr.vmem [resolvable:$true] %s576_s24 }
  0x24   : > { %329 = vperm.xlu0 %845, %v308_v2   ;;  %v322_v7 = vshrl.u32 %v321_v4, 7  ;;  %755 = vmatprep.subr.mxu0 %v980_v8  ;;  %v327_v10 = vand.u32 127, %v321_v4  ;;  %v448_v19 = vld [vmem:[%s1109_s16] sm:$0x1]  ;;  %vm371_vm9 = vcmask 64512   ;;  %vm446_vm10 = vcmask 58368  }
  0x25   : > { %761 = vmatpush3.msk.msra.mxu1 %vm463_vm2, %v309_v0  ;;  %762 = vmatprep.mubr.msk.f32.mxu1 %vm981_vm3, %v980_v8  ;;  %s553_s26 = scalar_lea.sflag [#allocation3], %s1084_s10  ;;  %s850_s27 = scalar_lea.vmem %s577_s24, 32 }
  0x26   : > { %v324_v9 = vadd.s32 %v323_v6, %v322_v7  ;;  %757 = vmatprep.mubr.msk.f32.mxu0 %vm981_vm3, %v980_v8  ;;  %p851_p0 = scmp.ne.s32.totalorder %s577_s24, %s850_s27  ;;  %s982_s7 = smov [#allocation2]  }
  0x27   : > { %s854_s8 = sshll.u32 %s982_s7, 4  ;;  %s855_s8 = int_to_ptr.vmem [resolvable:$false] %s854_s8 }
  0x28   : > { %vm325_vm4 = vcmp.lt.s32.totalorder %v324_v9, 48  ;;  %p852_p1 = pnand %p851_p0, %p1063_p3  ;;  %s856_s12 = scalar_lea.vmem %s855_s8, 64 }
  0x29   : > { %756 = vmatpush3.msk.msra.mxu0 %vm325_vm4, %v307_v1  ;;  %p857_p4 = scmp.lt.s32.totalorder %s577_s24, %s855_s8  ;;  %p858_p5 = scmp.lt.s32.totalorder %s856_s12, %s850_s27 }
  0x2a   : > { %p853_p2 = pneg %p852_p1 }
  0x2b   : > { %p859_p6 = por %p858_p5, %p857_p4 }
  0x2d   : > { %p860_p7 = pnand %p859_p6, %p853_p2 }
  0xa3   : > { %v330_v11 = vpop.permute.xlu0 %329 }
  0xa4   : > { %vm331_vm5 = vcmp.eq.s32.totalorder %v330_v11, %v327_v10 }
  0xa5   : > { %vm334_vm7 = vmand %vm325_vm4, %vm331_vm5 }
  0xa6   : > { %v741_v12 = vsel %vm334_vm7, 1.0, %v980_v8 }
  0xa7   : > { %339 = vxpose.xlu0.b32.start.end [1/1] (short) (narrow) %v741_v12, 8  ;;  %v450_v13 = vsel %vm449_vm6, %v741_v12, 0.0  ;;  %763 = vmatmul.mubr.msk.f32.vlgmr.msra.gmra.mrb[0].mxu1 %vm449_vm6, %v741_v12 }
  0xa8   : > { %v451_v14 = vrot.slane %v450_v13, 4 }
  0xaa   : > { %v452_v15 = vadd.f32 %v451_v14, %v450_v13 }
  0xac   : > { %v453_v16 = vrot.slane %v452_v15, 2 }
  0xae   : > { %v454_v17 = vadd.f32 %v453_v16, %v452_v15 }
  0xb0   : > { %v455_v18 = vrot.slane %v454_v17, 1 }
  0xb2   : > { %v456_v20 = vadd.f32 %v455_v18, %v454_v17 }
  0xb4   : > { %v457_v21 = vadd.f32 %v456_v20, %v448_v19 }
  0xb6   : > { %459 = vst.msk [vmem:[%s1109_s16] sm:$0x1] %vm458_vm8, %v457_v21 }
 0x127   : > { %v355_v22 = vpop.trf.xlu0 }
 0x128   : > { %758 = vmatmul.mubr.msk.f32.vlgmr.msra.gmra.mrb[0].mxu0 %vm371_vm9, %v355_v22 }
 0x17a   : > { %v533_v23 = vpop.f32.mrb[0].mxu1 }
 0x17b   : > { %v537_v24 = vsub.f32 1.0, %v533_v23  ;;  %v764_v25 = vpop.f32.mrb[1].mxu1 }
 0x17d   : > { %v538_v26 = vmul.f32 -1000000.0, %v537_v24 }
 0x17f   : > { %v539_v27 = vadd.f32 %v538_v26, %v307_v1 }
 0x181   : > { %v540_v28 = vsel %vm371_vm9, %v539_v27, -inf }
 0x182   : > { %541 = vmax.xlane.f32.xlu1 %v540_v28 }
 0x1fb   : > { %v441_v34 = vpop.f32.mrb[0].mxu0 }
 0x1fc   : > { %v759_v36 = vpop.f32.mrb[1].mxu0  ;;  %v445_v37 = vadd.f32 %v441_v34, %v338_v35 }
 0x1fe   : > { %447 = vst.msk [vmem:[%s1106_s11] sm:$0x3] %vm446_vm10, %v445_v37 }
 0x20f   : > { %v542_v29 = vpop.xlane.xlu1 %541 }
 0x210   : > { %v543_v30 = vsub.f32 %v539_v27, %v542_v29 }
 0x212   : > { %v544_v31 = vmul.f32 1.442695, %v543_v30 }
 0x214   : > { %846 = vpow2.f32 %v544_v31 }
 0x21e   : > { %v1118_v32 = vpop.eup %846 }
 0x21f   : > { %v546_v33 = vsel %vm371_vm9, %v1118_v32, 0.0 }
 0x220   : > { %547 = vadd.xlane.f32.xlu1 %v546_v33 }
 0x221   : > { %863 = shalt.err (!%p860_p7)
}
 0x222   : > { %s864_s11 = scalar_lea.hbm %s1129_s15, 32  ;;  %s868_s28 = scalar_lea.hbm %s1212_s3, 64 }
 0x223   : > { %p865_p8 = scmp.ne.s32.totalorder %s1129_s15, %s864_s11  ;;  %p869_p12 = scmp.lt.u32.totalorder %s1129_s15, %s1212_s3 }
 0x224   : > { %p870_p13 = scmp.lt.u32.totalorder %s868_s28, %s864_s11  ;;  %p872_p1 = scmp.lt.u32.totalorder %s864_s11, %s1129_s15 }
 0x225   : > { %p866_p10 = pnand %p865_p8, %p1063_p3 }
 0x226   : > { %p871_p0 = por %p870_p13, %p869_p12 }
 0x227   : > { %p867_p11 = pneg %p866_p10 }
 0x228   : > { %p873_p2 = por %p872_p1, %p871_p0 }
 0x22a   : > { %p874_p4 = pnand %p873_p2, %p867_p11 }
 0x22c   : > { %877 = shalt.err (!%p874_p4)
}
 0x22d   : > { %765 = dma.vmem_to_hbm [thread:$0]  (%p1063_p3), %s577_s24, 32, %s1129_s15, %s553_s26  }
 0x22e   : > { %s748_s27 = sshll.u32 %s964_s22, 4  ;;  %s589_s8 = sshll.u32 %s1109_s16, 4  ;;  %s590_s8 = int_to_ptr.vmem [resolvable:$true] %s589_s8 }
 0x22f   : > { %s1154_s21 = scalar_lea.hbm %s1213_s4, %s748_s27  ;;  %s558_s11 = scalar_lea.sflag [#allocation5], %s1084_s10 }
 0x230   : > { %s878_s28 = scalar_lea.vmem %s590_s8, 16  ;;  %s983_s14 = smov [#allocation4]  }
 0x231   : > { %p879_p5 = scmp.ne.s32.totalorder %s590_s8, %s878_s28  ;;  %s882_s7 = sshll.u32 %s983_s14, 4  ;;  %s883_s7 = int_to_ptr.vmem [resolvable:$false] %s882_s7 }
 0x232   : > { %s884_s13 = scalar_lea.vmem %s883_s7, 32  ;;  %p885_p8 = scmp.lt.s32.totalorder %s590_s8, %s883_s7 }
 0x233   : > { %p880_p6 = pnand %p879_p5, %p1063_p3  ;;  %p886_p10 = scmp.lt.s32.totalorder %s884_s13, %s878_s28 }
 0x235   : > { %p881_p7 = pneg %p880_p6  ;;  %p887_p11 = por %p886_p10, %p885_p8 }
 0x237   : > { %p888_p12 = pnand %p887_p11, %p881_p7 }
 0x239   : > { %891 = shalt.err (!%p888_p12)
}
 0x23a   : > { %s892_s22 = scalar_lea.hbm %s1154_s21, 16  ;;  %s896_s24 = scalar_lea.hbm %s1213_s4, 32 }
 0x23b   : > { %p893_p13 = scmp.ne.s32.totalorder %s1154_s21, %s892_s22  ;;  %p897_p2 = scmp.lt.u32.totalorder %s1154_s21, %s1213_s4 }
 0x23c   : > { %p898_p4 = scmp.lt.u32.totalorder %s896_s24, %s892_s22  ;;  %p900_p6 = scmp.lt.u32.totalorder %s892_s22, %s1154_s21 }
 0x23d   : > { %p894_p0 = pnand %p893_p13, %p1063_p3 }
 0x23e   : > { %p899_p5 = por %p898_p4, %p897_p2 }
 0x23f   : > { %p895_p1 = pneg %p894_p0 }
 0x240   : > { %p901_p7 = por %p900_p6, %p899_p5 }
 0x242   : > { %p902_p8 = pnand %p901_p7, %p895_p1 }
 0x244   : > { %905 = shalt.err (!%p902_p8)
}
 0x245   : > { %766 = dma.vmem_to_hbm [thread:$0]  (%p1063_p3), %s590_s8, 16, %s1154_s21, %s558_s11  }
 0x246   : > { %s1222_s12 = scalar_lea.vmem %s1214_s5, %s1092_s17 }
 0x2ad   : > { %v548_v38 = vpop.xlane.xlu1 %547 }
 0x2ae   : > { %848 = vrcp.f32 %v548_v38 }
 0x2b8   : > { %v849_v39 = vpop.eup %848 }
 0x2b9   : > { %v550_v40 = vmul.f32 %v849_v39, %v1118_v32 }
 0x2bb   : > { %551 = vst.msk [vmem:[%s1222_s12] sm:$0xff] %vm371_vm9, %v550_v40 }
 0x2bc PF: > { %p776_p10 = scmp.ge.s32.totalorder %s976_s25, 2  ;;  %s606_s30 = sand.u32 1, %s948_s18  }
 0x2bd   : > { %s607_s8 = scalar_lea.sflag [#allocation3], %s606_s30 }
 0x2be   : > { %p770_p11 = pnand %p776_p10, %p1073_p9 }
 0x2c0   : > { %939 = dma.done.wait (!%p770_p11), %s607_s8, 32  }
 0x2c1   : > { %941 = vsyncadd (!%p770_p11), %s607_s8, 4294967264  ;;  %s616_s29 = scalar_lea.sflag [#allocation5], %s606_s30 }
 0x2c2   : > { %943 = dma.done.wait (!%p770_p11), %s616_s29, 16  }
 0x2c3   : > { %945 = vsyncadd (!%p770_p11), %s616_s29, 4294967280  ;;  %s22_s25 = sadd.s32 1, %s976_s25   ;;  %s1223_s22 = sld [smem:[#allocation8_spill]] }
 0x2c4   : > { %p19_p3 = scmp.ge.s32.totalorder %s22_s25, 8   ;;  %s1224_s17 = sld [smem:[#allocation9_spill]] }
 0x2c5   : > { %s1225_s24 = sld [smem:[#allocation10_spill]]  ;;  %s1226_s18 = smov %s952_s19 }
 0x2c6   : > { %s1227_s19 = smov %s956_s20  ;;  %s1228_s20 = smov %s1081_s9 }
 0x2c7   : > { %s1229_s21 = smov %s968_s23  ;;  %21 = sbr.rel (!%p19_p3) target bundleno = 7 (0x7), region = 103 }
 0x2ca   : > { %s1230_s23 = smov %s1224_s17 }
 0x2ce   :  { %629 = vsyncpa [#allocation3], 1 }
 0x2cf   :  { %631 = vsyncpa [#allocation3 + $0x1], 1 }
 0x2d0   :  { %632 = vsyncpa [#allocation5], 1 }
 0x2d1   :  { %634 = vsyncpa [#allocation5 + $0x1], 1 }

</bundles_post_ra>
